<compile_context>
chip_gen: v7x
topology: tpu7x:2x2x1
jax: 0.10.0
libtpu: 0.0.40
codegen_flags: <defaults>
</compile_context>

<pallas_src>
import math

import jax
import jax.numpy as jnp
from jax.experimental import pallas as pl
from jax.experimental.pallas import tpu as pltpu


def _round_up(x, m):
    return -(-x // m) * m


def _choose_pack(d_inp, d_model, itemsize=4, max_w_bytes=2 * 1024 * 1024):
    """Logical rows packed per kernel row so the packed output (and, budget
    permitting, the packed input) last dim is a multiple of the 128-lane width."""
    p_out = 128 // math.gcd(128, d_model)            # lane-dense output
    p_in = 128 // math.gcd(128, d_inp)               # lane-dense input
    p_both = p_out * p_in // math.gcd(p_out, p_in)   # lcm: both lane-dense
    for p in (p_both, p_out, 1):
        if itemsize * (p * d_inp) * (p * d_model) <= max_w_bytes:
            return p
    return 1


def _packed_linear_kernel(x_ref, w_ref, o_ref):
    # x_ref: (TILE_M, P*d_inp), w_ref: (P*d_inp, P*d_model), o_ref: (TILE_M, P*d_model)
    o_ref[...] = jnp.dot(
        x_ref[...], w_ref[...], preferred_element_type=jnp.float32
    ).astype(o_ref.dtype)


def time_feature_embedding(x, weight, *, min_rows_for_pallas=1024, max_tile_rows=1024):
    """TimeFeatureEmbedding forward: y = x @ weight.T (nn.Linear, bias=False).

    x: (B, L, d_inp) ; weight: (d_model, d_inp) (PyTorch Linear layout).
    Returns (B, L, d_model).
    """
    B, L, d_inp = x.shape
    d_model = weight.shape[0]
    M = B * L

    # Tiny problems: per-call / per-grid-step overhead dwarfs 2*M*d_inp*d_model FLOPs.
    if M < min_rows_for_pallas:
        return jnp.einsum("bld,md->blm", x, weight.astype(x.dtype))

    itemsize = jnp.dtype(x.dtype).itemsize
    P = _choose_pack(d_inp, d_model, itemsize=itemsize)
    K_p, N_p = P * d_inp, P * d_model

    # --- tile the packed-M axis; size the tile against a VMEM budget that is safe
    #     on all generations (double-buffered x + out tiles target ~8 MiB) ---
    per_row_bytes = itemsize * (K_p + N_p)           # one packed row, in + out
    tile_budget = 8 * 1024 * 1024
    tile_m = tile_budget // (2 * per_row_bytes)
    tile_m = max(8, min(max_tile_rows, (tile_m // 8) * 8))

    m_packed = -(-M // P)
    tile_m = min(tile_m, _round_up(m_packed, 8))
    grid_m = -(-m_packed // tile_m)
    m_packed_pad = grid_m * tile_m
    m_pad = m_packed_pad * P

    # --- wrapper-side packing: P logical rows per kernel row (lane-dense blocks) ---
    x2d = x.reshape(M, d_inp)
    if m_pad > M:
        x2d = jnp.pad(x2d, ((0, m_pad - M), (0, 0)))
    x_packed = x2d.reshape(m_packed_pad, K_p)

    # Block-diagonal weight: block (p, p) = weight.T, so the packed matmul computes
    # each logical row's x @ weight.T side by side along the lane dimension.
    w_t = weight.T.astype(x.dtype)                   # (d_inp, d_model)
    if P > 1:
        eye = jnp.eye(P, dtype=x.dtype)
        w_bd = jnp.einsum("pq,kn->pkqn", eye, w_t).reshape(K_p, N_p)
    else:
        w_bd = w_t

    w_bytes = itemsize * K_p * N_p
    vmem_need = 2 * w_bytes + 2 * tile_m * per_row_bytes + (2 << 20)
    vmem_limit = int(min(32 * 1024 * 1024, max(4 * 1024 * 1024, vmem_need)))

    cost = pl.CostEstimate(
        flops=2 * M * d_inp * d_model,
        transcendentals=0,
        bytes_accessed=itemsize * (M * d_inp + d_inp * d_model + M * d_model),
    )

    out_packed = pl.pallas_call(
        _packed_linear_kernel,
        out_shape=jax.ShapeDtypeStruct((m_packed_pad, N_p), x.dtype),
        grid_spec=pltpu.PrefetchScalarGridSpec(
            num_scalar_prefetch=0,
            grid=(grid_m,),
            in_specs=[
                pl.BlockSpec((tile_m, K_p), lambda i: (i, 0)),  # streamed x tile
                pl.BlockSpec((K_p, N_p), lambda i: (0, 0)),     # resident weight
            ],
            out_specs=pl.BlockSpec((tile_m, N_p), lambda i: (i, 0)),
        ),
        compiler_params=pltpu.CompilerParams(
            dimension_semantics=("parallel",),   # megacore-shard M on v7x
            vmem_limit_bytes=vmem_limit,
        ),
        cost_estimate=cost,
    )(x_packed, w_bd)

    # Unpack: contiguous reshape back to (M, d_model), drop padding rows.
    out2d = out_packed.reshape(m_pad, d_model)[:M]
    return out2d.reshape(B, L, d_model)


if __name__ == "__main__":
    # Module config: freq='h' -> d_inp = 4; small d_model.
    d_inp = 4
    d_model = 32

    key = jax.random.PRNGKey(0)
    kx, kw, kx2 = jax.random.split(key, 3)

    # Deterministic weight (PyTorch Linear layout: (d_model, d_inp)).
    bound = 1.0 / (d_inp ** 0.5)
    weight = jax.random.uniform(
        kw, (d_model, d_inp), dtype=jnp.float32, minval=-bound, maxval=bound
    )

    # 1) Small shape (B=2, L=8): force the Pallas path so the kernel itself runs
    #    (the default size guard would otherwise route this to the XLA fallback).
    B, L = 2, 8
    x = jax.random.normal(kx, (B, L, d_inp), dtype=jnp.float32)
    out = jax.block_until_ready(
        time_feature_embedding(x, weight, min_rows_for_pallas=0)
    )
    ref = jnp.einsum("bld,md->blm", x, weight)
    assert out.shape == (B, L, d_model)
    assert jnp.allclose(out, ref, atol=1e-5, rtol=1e-5)

    # 2) Larger shape through the default tiled path, with a small tile so the
    #    grid has multiple steps (exercises the index_map / pipelined DMA path).
    B2, L2 = 4, 512
    x2 = jax.random.normal(kx2, (B2, L2, d_inp), dtype=jnp.float32)
    out2 = jax.block_until_ready(
        time_feature_embedding(x2, weight, max_tile_rows=16)
    )
    ref2 = jnp.einsum("bld,md->blm", x2, weight)
    assert out2.shape == (B2, L2, d_model)
    assert jnp.allclose(out2, ref2, atol=1e-5, rtol=1e-5)

    print("KERNEL_OK")
</pallas_src>

<mosaic_0001>
module attributes {stable_mosaic.version = 11 : i64} {
  func.func @_packed_linear_kernel(%arg0: i32, %arg1: memref<8x128xf32, #tpu.memory_space<vmem>>, %arg2: memref<128x1024xf32, #tpu.memory_space<vmem>>, %arg3: memref<8x1024xf32, #tpu.memory_space<vmem>>) attributes {dimension_semantics = [#tpu.dimension_semantics<parallel>], iteration_bounds = array<i64: 1>, scalar_prefetch = 0 : i64, scratch_operands = 0 : i64, tpu.core_type = #tpu.core_type<tc>, window_params = [{transform_indices = @transform_0, window_bounds = array<i64: 8, 128>}, {pipeline_mode = #tpu.pipeline_mode<synchronous>, transform_indices = @transform_1, window_bounds = array<i64: 128, 1024>}, {transform_indices = @transform_2, window_bounds = array<i64: 8, 1024>}]} {
    %c0 = arith.constant 0 : index
    %c0_0 = arith.constant 0 : index
    %0 = vector.load %arg1[%c0, %c0_0] : memref<8x128xf32, #tpu.memory_space<vmem>>, vector<8x128xf32>
    %c0_1 = arith.constant 0 : index
    %c0_2 = arith.constant 0 : index
    %1 = vector.load %arg2[%c0_1, %c0_2] : memref<128x1024xf32, #tpu.memory_space<vmem>>, vector<128x1024xf32>
    %cst = arith.constant dense<0.000000e+00> : vector<8x1024xf32>
    %2 = tpu.matmul %0, %1, %cst {dimension_numbers = #tpu.dot_dimension_numbers<[1], [0], [0], [1], [0, 0, 1, 1], [], []>} : vector<8x128xf32>, vector<128x1024xf32>, vector<8x1024xf32> -> vector<8x1024xf32>
    %c0_3 = arith.constant 0 : index
    %c0_4 = arith.constant 0 : index
    %3 = vector.load %arg3[%c0_3, %c0_4] : memref<8x1024xf32, #tpu.memory_space<vmem>>, vector<8x1024xf32>
    tpu.vector_store %arg3[%c0_3, %c0_4], %2 {strides = array<i32>} : memref<8x1024xf32, #tpu.memory_space<vmem>>, vector<8x1024xf32>,
    return
  }
  func.func @transform_0(%arg0: i32) -> (i32, i32) {
    %c0_i32 = arith.constant 0 : i32
    %c0_i32_0 = arith.constant 0 : i32
    return %arg0, %c0_i32 : i32, i32
  }
  func.func @transform_1(%arg0: i32) -> (i32, i32) {
    %c0_i32 = arith.constant 0 : i32
    %c0_i32_0 = arith.constant 0 : i32
    %c0_i32_1 = arith.constant 0 : i32
    return %c0_i32, %c0_i32_0 : i32, i32
  }
  func.func @transform_2(%arg0: i32) -> (i32, i32) {
    %c0_i32 = arith.constant 0 : i32
    %c0_i32_0 = arith.constant 0 : i32
    return %arg0, %c0_i32 : i32, i32
  }
}

</mosaic_0001>

<bundles_post_ra>
// kernel: tpu_custom_call.1
= control target key start
LH: loop header
LB: loop body
LE: loop exit
PB: predicated region body
PF: predicated region fallthrough
CT: control target
= control target key end

     0   :  { %7 = vsyncpa [#allocation3], 0  ;;  %s755_s0 = inlined_call_operand.hbm [shape: f32[8,128], index: 0, kind: input, shape index: {}]   ;;  %s756_s1 = inlined_call_operand.hbm [shape: f32[128,1024], index: 1, kind: input, shape index: {}]   ;;  %s757_s2 = inlined_call_operand.hbm [shape: f32[8,1024], index: 2, kind: output, shape index: {}]  }
   0x1   :  { %8 = vsyncpa [#allocation6], 0 }
   0x2   :  { %9 = vsyncpa [#allocation4], 0  ;;  %s681_s9 = smov [#allocation2]   ;;  %s682_s11 = smov [#allocation5]  }
   0x3   :  { %s16_s10 = sshll.u32 %s681_s9, 4  ;;  %s25_s12 = sshll.u32 %s682_s11, 4  ;;  %s17_s10 = int_to_ptr.vmem [resolvable:$true] %s16_s10  ;;  %s702_s12 = int_to_ptr.vmem [resolvable:$true] %s25_s12 }
   0x4   :  { %s609_s15 = scalar_lea.hbm %s755_s0, 128 }
   0x5   :  { %p610_p0 = scmp.ne.s32.totalorder %s755_s0, %s609_s15  ;;  %p613_p1 = scmp.lt.u32.totalorder %s609_s15, %s755_s0 }
   0x7   :  { %p615_p2 = pnand %p613_p1, %p610_p0 }
   0x9   :  { %618 = shalt.err (!%p615_p2)
}
   0xa   :  { %s619_s20 = scalar_lea.vmem %s17_s10, 128  ;;  %p624_p4 = scmp.lt.s32.totalorder %s17_s10, %s17_s10 }
   0xb   :  { %p620_p3 = scmp.ne.s32.totalorder %s17_s10, %s619_s20  ;;  %p625_p5 = scmp.lt.s32.totalorder %s619_s20, %s619_s20 }
   0xd   :  { %p626_p6 = por %p625_p5, %p624_p4 }
   0xf   :  { %p627_p7 = pnand %p626_p6, %p620_p3 }
  0x11   :  { %630 = shalt.err (!%p627_p7)
}
  0x12   :  { %19 = dma.hbm_to_vmem [thread:$0]  %s755_s0, 128, %s17_s10, [#allocation3]  }
  0x13   :  { %s631_s25 = scalar_lea.hbm %s756_s1, 16384 }
  0x14   :  { %p632_p8 = scmp.ne.s32.totalorder %s756_s1, %s631_s25  ;;  %p635_p9 = scmp.lt.u32.totalorder %s631_s25, %s756_s1 }
  0x16   :  { %p637_p10 = pnand %p635_p9, %p632_p8 }
  0x18   :  { %640 = shalt.err (!%p637_p10)
}
  0x19   :  { %s641_s30 = scalar_lea.vmem %s702_s12, 16384  ;;  %p646_p12 = scmp.lt.s32.totalorder %s702_s12, %s702_s12 }
  0x1a   :  { %p642_p11 = scmp.ne.s32.totalorder %s702_s12, %s641_s30  ;;  %p647_p13 = scmp.lt.s32.totalorder %s641_s30, %s641_s30 }
  0x1c   :  { %p648_p0 = por %p647_p13, %p646_p12 }
  0x1e   :  { %p649_p1 = pnand %p648_p0, %p642_p11 }
  0x20   :  { %652 = shalt.err (!%p649_p1)
}
  0x21   :  { %s683_s0 = smov 1024   ;;  %s684_s3 = smov 64  }
  0x22   :  { %31 = dma.hbm_to_vmem [thread:$0]  %s756_s1, 16384, %s702_s12, [#allocation6], %s683_s0, %s683_s0, %s684_s3  }
  0x23   :  { %675 = dma.done.wait [#allocation3], 128  }
  0x24   :  { %676 = vsyncadd [#allocation3], 4294967168 }
  0x25   :  { %677 = dma.done.wait [#allocation6], 16384  }
  0x26   :  { %678 = vsyncadd [#allocation6], 4294950912  ;;  %v685_v0 = vmov 0.0   ;;  %v40_v1 = vld [vmem:[#allocation5 + $0x8] sm:$0xff]  ;;  %v42_v3 = vld [vmem:[#allocation5 + $0x18] sm:$0xff]  ;;  %s686_s1 = smov [#allocation7]  }
  0x27   :  { %231 = vmatprep.mubr.f32.mxu0 %v685_v0  ;;  %302 = vmatprep.mubr.f32.mxu1 %v685_v0  ;;  %v48_v2 = vld [vmem:[#allocation5 + $0x48] sm:$0xff]  ;;  %v50_v5 = vld [vmem:[#allocation5 + $0x58] sm:$0xff]  ;;  %v39_v6 = vld [vmem:[#allocation5] sm:$0xff]  ;;  %s465_s6 = sshll.u32 %s686_s1, 4  ;;  %s466_s6 = int_to_ptr.vmem [resolvable:$true] %s465_s6 }
  0x28   :  { %v475_v4 = vpack.c.bf16 %v48_v2, %v40_v1  ;;  %v47_v7 = vld [vmem:[#allocation5 + $0x40] sm:$0xff]  ;;  %v507_v8 = vpack.c.bf16 %v50_v5, %v42_v3  ;;  %v41_v10 = vld [vmem:[#allocation5 + $0x10] sm:$0xff]  ;;  %v56_v12 = vld [vmem:[#allocation5 + $0x88] sm:$0xff]  ;;  %s653_s7 = scalar_lea.vmem %s466_s6, 1024  ;;  %p658_p3 = scmp.lt.s32.totalorder %s466_s6, %s466_s6 }
  0x29   :  { %v477_v9 = vpack.c.bf16 %v47_v7, %v39_v6  ;;  %v49_v11 = vld [vmem:[#allocation5 + $0x50] sm:$0xff]  ;;  %v64_v14 = vld [vmem:[#allocation5 + $0xc8] sm:$0xff]  ;;  %v58_v15 = vld [vmem:[#allocation5 + $0x98] sm:$0xff]  ;;  %p654_p2 = scmp.ne.s32.totalorder %s466_s6, %s653_s7  ;;  %p659_p4 = scmp.lt.s32.totalorder %s653_s7, %s653_s7 }
  0x2a   :  { %476 = vmatprep.subr.bf16.mxu0 %v475_v4  ;;  %v509_v13 = vpack.c.bf16 %v49_v11, %v41_v10  ;;  %v66_v16 = vld [vmem:[#allocation5 + $0xd8] sm:$0xff]  ;;  %508 = vmatprep.subr.bf16.mxu1 %v507_v8  ;;  %v479_v17 = vpack.c.bf16 %v64_v14, %v56_v12  ;;  %v55_v19 = vld [vmem:[#allocation5 + $0x80] sm:$0xff]  ;;  %v57_v21 = vld [vmem:[#allocation5 + $0x90] sm:$0xff] }
  0x2b   :  { %478 = vmatpush1.bf16.msra.mxu0 %v477_v9  ;;  %v511_v18 = vpack.c.bf16 %v66_v16, %v58_v15  ;;  %v63_v20 = vld [vmem:[#allocation5 + $0xc0] sm:$0xff]  ;;  %v65_v23 = vld [vmem:[#allocation5 + $0xd0] sm:$0xff]  ;;  %v72_v24 = vld [vmem:[#allocation5 + $0x108] sm:$0xff]  ;;  %p660_p5 = por %p659_p4, %p658_p3 }
  0x2c   :  { %510 = vmatpush1.bf16.msra.mxu1 %v509_v13  ;;  %v481_v22 = vpack.c.bf16 %v63_v20, %v55_v19  ;;  %v80_v25 = vld [vmem:[#allocation5 + $0x148] sm:$0xff]  ;;  %480 = vmatprep.subr.bf16.mxu0 %v479_v17  ;;  %v513_v26 = vpack.c.bf16 %v65_v23, %v57_v21  ;;  %v74_v28 = vld [vmem:[#allocation5 + $0x118] sm:$0xff]  ;;  %v71_v30 = vld [vmem:[#allocation5 + $0x100] sm:$0xff] }
  0x2d   :  { %512 = vmatprep.subr.bf16.mxu1 %v511_v18  ;;  %v483_v27 = vpack.c.bf16 %v80_v25, %v72_v24  ;;  %v82_v29 = vld [vmem:[#allocation5 + $0x158] sm:$0xff]  ;;  %v79_v32 = vld [vmem:[#allocation5 + $0x140] sm:$0xff]  ;;  %v73_v33 = vld [vmem:[#allocation5 + $0x110] sm:$0xff]  ;;  %p661_p6 = pnand %p660_p5, %p654_p2 }
  0x2e   :  { %v515_v31 = vpack.c.bf16 %v82_v29, %v74_v28  ;;  %v81_v34 = vld [vmem:[#allocation5 + $0x150] sm:$0xff]  ;;  %v485_v35 = vpack.c.bf16 %v79_v32, %v71_v30  ;;  %v88_v36 = vld [vmem:[#allocation5 + $0x188] sm:$0xff]  ;;  %v90_v38 = vld [vmem:[#allocation5 + $0x198] sm:$0xff] }
  0x2f   :  { %482 = vmatpush1.bf16.msra.mxu0 %v481_v22  ;;  %v96_v37 = vld [vmem:[#allocation5 + $0x1c8] sm:$0xff]  ;;  %v517_v39 = vpack.c.bf16 %v81_v34, %v73_v33  ;;  %v98_v41 = vld [vmem:[#allocation5 + $0x1d8] sm:$0xff]  ;;  %v87_v42 = vld [vmem:[#allocation5 + $0x180] sm:$0xff] }
  0x30   :  { %514 = vmatpush1.bf16.msra.mxu1 %v513_v26  ;;  %484 = vmatprep.subr.bf16.mxu0 %v483_v27  ;;  %v487_v40 = vpack.c.bf16 %v96_v37, %v88_v36  ;;  %v95_v43 = vld [vmem:[#allocation5 + $0x1c0] sm:$0xff]  ;;  %v519_v44 = vpack.c.bf16 %v98_v41, %v90_v38  ;;  %v89_v45 = vld [vmem:[#allocation5 + $0x190] sm:$0xff]  ;;  %v104_v47 = vld [vmem:[#allocation5 + $0x208] sm:$0xff] }
  0x31   :  { %516 = vmatprep.subr.bf16.mxu1 %v515_v31  ;;  %v97_v46 = vld [vmem:[#allocation5 + $0x1d0] sm:$0xff]  ;;  %v112_v48 = vld [vmem:[#allocation5 + $0x248] sm:$0xff]  ;;  %v106_v49 = vld [vmem:[#allocation5 + $0x218] sm:$0xff]  ;;  %v489_v51 = vpack.c.bf16 %v95_v43, %v87_v42 }
  0x32   :  { %v114_v50 = vld [vmem:[#allocation5 + $0x258] sm:$0xff]  ;;  %v521_v52 = vpack.c.bf16 %v97_v46, %v89_v45  ;;  %v491_v53 = vpack.c.bf16 %v112_v48, %v104_v47  ;;  %v103_v54 = vld [vmem:[#allocation5 + $0x200] sm:$0xff]  ;;  %v105_v56 = vld [vmem:[#allocation5 + $0x210] sm:$0xff] }
  0x33   :  { %486 = vmatpush1.bf16.msra.mxu0 %v485_v35  ;;  %v111_v55 = vld [vmem:[#allocation5 + $0x240] sm:$0xff]  ;;  %v523_v57 = vpack.c.bf16 %v114_v50, %v106_v49  ;;  %v113_v58 = vld [vmem:[#allocation5 + $0x250] sm:$0xff]  ;;  %v120_v59 = vld [vmem:[#allocation5 + $0x288] sm:$0xff] }
  0x34   :  { %518 = vmatpush1.bf16.msra.mxu1 %v517_v39  ;;  %488 = vmatprep.subr.bf16.mxu0 %v487_v40  ;;  %v128_v60 = vld [vmem:[#allocation5 + $0x2c8] sm:$0xff]  ;;  %v122_v61 = vld [vmem:[#allocation5 + $0x298] sm:$0xff]  ;;  %v493_v63 = vpack.c.bf16 %v111_v55, %v103_v54  ;;  %v525_v1 = vpack.c.bf16 %v113_v58, %v105_v56  ;;  %v119_v3 = vld [vmem:[#allocation5 + $0x280] sm:$0xff] }
  0x35   :  { %520 = vmatprep.subr.bf16.mxu1 %v519_v44  ;;  %v130_v62 = vld [vmem:[#allocation5 + $0x2d8] sm:$0xff]  ;;  %v495_v2 = vpack.c.bf16 %v128_v60, %v120_v59  ;;  %v127_v4 = vld [vmem:[#allocation5 + $0x2c0] sm:$0xff]  ;;  %v121_v5 = vld [vmem:[#allocation5 + $0x290] sm:$0xff] }
  0x36   :  { %v527_v6 = vpack.c.bf16 %v130_v62, %v122_v61  ;;  %v129_v7 = vld [vmem:[#allocation5 + $0x2d0] sm:$0xff]  ;;  %v136_v8 = vld [vmem:[#allocation5 + $0x308] sm:$0xff]  ;;  %v138_v10 = vld [vmem:[#allocation5 + $0x318] sm:$0xff]  ;;  %v497_v12 = vpack.c.bf16 %v127_v4, %v119_v3 }
  0x37   :  { %490 = vmatpush1.bf16.msra.mxu0 %v489_v51  ;;  %v144_v9 = vld [vmem:[#allocation5 + $0x348] sm:$0xff]  ;;  %v146_v11 = vld [vmem:[#allocation5 + $0x358] sm:$0xff]  ;;  %v529_v13 = vpack.c.bf16 %v129_v7, %v121_v5  ;;  %v135_v15 = vld [vmem:[#allocation5 + $0x300] sm:$0xff] }
  0x38   :  { %522 = vmatpush1.bf16.msra.mxu1 %v521_v52  ;;  %492 = vmatprep.subr.bf16.mxu0 %v491_v53  ;;  %v499_v14 = vpack.c.bf16 %v144_v9, %v136_v8  ;;  %v143_v16 = vld [vmem:[#allocation5 + $0x340] sm:$0xff]  ;;  %v137_v17 = vld [vmem:[#allocation5 + $0x310] sm:$0xff]  ;;  %v531_v18 = vpack.c.bf16 %v146_v11, %v138_v10  ;;  %v152_v20 = vld [vmem:[#allocation5 + $0x388] sm:$0xff] }
  0x39   :  { %524 = vmatprep.subr.bf16.mxu1 %v523_v57  ;;  %v145_v19 = vld [vmem:[#allocation5 + $0x350] sm:$0xff]  ;;  %v160_v21 = vld [vmem:[#allocation5 + $0x3c8] sm:$0xff]  ;;  %v154_v22 = vld [vmem:[#allocation5 + $0x398] sm:$0xff]  ;;  %v501_v24 = vpack.c.bf16 %v143_v16, %v135_v15 }
  0x3a   :  { %v162_v23 = vld [vmem:[#allocation5 + $0x3d8] sm:$0xff]  ;;  %v533_v25 = vpack.c.bf16 %v145_v19, %v137_v17  ;;  %v503_v26 = vpack.c.bf16 %v160_v21, %v152_v20  ;;  %v151_v27 = vld [vmem:[#allocation5 + $0x380] sm:$0xff]  ;;  %v153_v29 = vld [vmem:[#allocation5 + $0x390] sm:$0xff] }
  0x3b   :  { %494 = vmatpush1.bf16.msra.mxu0 %v493_v63  ;;  %v159_v28 = vld [vmem:[#allocation5 + $0x3c0] sm:$0xff]  ;;  %v535_v30 = vpack.c.bf16 %v162_v23, %v154_v22  ;;  %v161_v31 = vld [vmem:[#allocation5 + $0x3d0] sm:$0xff]  ;;  %v44_v32 = vld [vmem:[#allocation5 + $0x28] sm:$0xff] }
  0x3c   :  { %526 = vmatpush1.bf16.msra.mxu1 %v525_v1  ;;  %496 = vmatprep.subr.bf16.mxu0 %v495_v2  ;;  %v52_v33 = vld [vmem:[#allocation5 + $0x68] sm:$0xff]  ;;  %v46_v34 = vld [vmem:[#allocation5 + $0x38] sm:$0xff]  ;;  %v505_v36 = vpack.c.bf16 %v159_v28, %v151_v27  ;;  %v537_v37 = vpack.c.bf16 %v161_v31, %v153_v29  ;;  %v43_v39 = vld [vmem:[#allocation5 + $0x20] sm:$0xff] }
  0x3d   :  { %528 = vmatprep.subr.bf16.mxu1 %v527_v6  ;;  %v54_v35 = vld [vmem:[#allocation5 + $0x78] sm:$0xff]  ;;  %v539_v38 = vpack.c.bf16 %v52_v33, %v44_v32  ;;  %v51_v40 = vld [vmem:[#allocation5 + $0x60] sm:$0xff]  ;;  %v45_v41 = vld [vmem:[#allocation5 + $0x30] sm:$0xff] }
  0x3e   :  { %v571_v42 = vpack.c.bf16 %v54_v35, %v46_v34  ;;  %v53_v43 = vld [vmem:[#allocation5 + $0x70] sm:$0xff]  ;;  %v60_v44 = vld [vmem:[#allocation5 + $0xa8] sm:$0xff]  ;;  %v62_v46 = vld [vmem:[#allocation5 + $0xb8] sm:$0xff]  ;;  %v541_v49 = vpack.c.bf16 %v51_v40, %v43_v39 }
  0x3f   :  { %498 = vmatpush1.bf16.msra.mxu0 %v497_v12  ;;  %v68_v45 = vld [vmem:[#allocation5 + $0xe8] sm:$0xff]  ;;  %v70_v47 = vld [vmem:[#allocation5 + $0xf8] sm:$0xff]  ;;  %v573_v50 = vpack.c.bf16 %v53_v43, %v45_v41  ;;  %v59_v52 = vld [vmem:[#allocation5 + $0xa0] sm:$0xff] }
  0x40   :  { %530 = vmatpush1.bf16.msra.mxu1 %v529_v13  ;;  %500 = vmatprep.subr.bf16.mxu0 %v499_v14  ;;  %v735_v48 = vld [vmem:[#allocation2] sm:$0xff]  ;;  %v543_v51 = vpack.c.bf16 %v68_v45, %v60_v44  ;;  %v67_v53 = vld [vmem:[#allocation5 + $0xe0] sm:$0xff]  ;;  %v61_v54 = vld [vmem:[#allocation5 + $0xb0] sm:$0xff]  ;;  %v575_v55 = vpack.c.bf16 %v70_v47, %v62_v46 }
  0x41   :  { %532 = vmatprep.subr.bf16.mxu1 %v531_v18  ;;  %v69_v56 = vld [vmem:[#allocation5 + $0xf0] sm:$0xff]  ;;  %v76_v57 = vld [vmem:[#allocation5 + $0x128] sm:$0xff]  ;;  %v78_v59 = vld [vmem:[#allocation5 + $0x138] sm:$0xff]  ;;  %v545_v61 = vpack.c.bf16 %v67_v53, %v59_v52 }
  0x42   :  { %v84_v58 = vld [vmem:[#allocation5 + $0x168] sm:$0xff]  ;;  %v86_v60 = vld [vmem:[#allocation5 + $0x178] sm:$0xff]  ;;  %v577_v62 = vpack.c.bf16 %v69_v56, %v61_v54  ;;  %v75_v1 = vld [vmem:[#allocation5 + $0x120] sm:$0xff] }
  0x43   :  { %502 = vmatpush1.bf16.msra.mxu0 %v501_v24  ;;  %v547_v63 = vpack.c.bf16 %v84_v58, %v76_v57  ;;  %v83_v2 = vld [vmem:[#allocation5 + $0x160] sm:$0xff]  ;;  %v77_v3 = vld [vmem:[#allocation5 + $0x130] sm:$0xff]  ;;  %v579_v4 = vpack.c.bf16 %v86_v60, %v78_v59  ;;  %v92_v6 = vld [vmem:[#allocation5 + $0x1a8] sm:$0xff] }
  0x44   :  { %534 = vmatpush1.bf16.msra.mxu1 %v533_v25  ;;  %504 = vmatprep.subr.bf16.mxu0 %v503_v26  ;;  %v85_v5 = vld [vmem:[#allocation5 + $0x170] sm:$0xff]  ;;  %v100_v7 = vld [vmem:[#allocation5 + $0x1e8] sm:$0xff]  ;;  %v94_v8 = vld [vmem:[#allocation5 + $0x1b8] sm:$0xff]  ;;  %v549_v10 = vpack.c.bf16 %v83_v2, %v75_v1 }
  0x45   :  { %536 = vmatprep.subr.bf16.mxu1 %v535_v30  ;;  %v102_v9 = vld [vmem:[#allocation5 + $0x1f8] sm:$0xff]  ;;  %v581_v11 = vpack.c.bf16 %v85_v5, %v77_v3  ;;  %v551_v12 = vpack.c.bf16 %v100_v7, %v92_v6  ;;  %v91_v13 = vld [vmem:[#allocation5 + $0x1a0] sm:$0xff]  ;;  %v93_v15 = vld [vmem:[#allocation5 + $0x1b0] sm:$0xff] }
  0x46   :  { %v99_v14 = vld [vmem:[#allocation5 + $0x1e0] sm:$0xff]  ;;  %v583_v16 = vpack.c.bf16 %v102_v9, %v94_v8  ;;  %v101_v17 = vld [vmem:[#allocation5 + $0x1f0] sm:$0xff]  ;;  %v108_v18 = vld [vmem:[#allocation5 + $0x228] sm:$0xff] }
  0x47   :  { %506 = vmatpush1.bf16.msra.mxu0 %v505_v36  ;;  %v116_v19 = vld [vmem:[#allocation5 + $0x268] sm:$0xff]  ;;  %v110_v20 = vld [vmem:[#allocation5 + $0x238] sm:$0xff]  ;;  %v553_v22 = vpack.c.bf16 %v99_v14, %v91_v13  ;;  %v107_v24 = vld [vmem:[#allocation5 + $0x220] sm:$0xff] }
  0x48   :  { %538 = vmatpush1.bf16.msra.mxu1 %v537_v37  ;;  %540 = vmatprep.subr.bf16.mxu0 %v539_v38  ;;  %v118_v21 = vld [vmem:[#allocation5 + $0x278] sm:$0xff]  ;;  %v555_v23 = vpack.c.bf16 %v116_v19, %v108_v18  ;;  %v115_v25 = vld [vmem:[#allocation5 + $0x260] sm:$0xff]  ;;  %v109_v26 = vld [vmem:[#allocation5 + $0x230] sm:$0xff] }
  0x49   :  { %572 = vmatprep.subr.bf16.mxu1 %v571_v42  ;;  %v587_v27 = vpack.c.bf16 %v118_v21, %v110_v20  ;;  %v117_v28 = vld [vmem:[#allocation5 + $0x270] sm:$0xff]  ;;  %v124_v29 = vld [vmem:[#allocation5 + $0x2a8] sm:$0xff]  ;;  %v126_v31 = vld [vmem:[#allocation5 + $0x2b8] sm:$0xff]  ;;  %v557_v33 = vpack.c.bf16 %v115_v25, %v107_v24 }
  0x4a   :  { %232 = vmatmul.mubr.f32.vlgmr.msra.gmra.mrb[0].mxu0 %v735_v48  ;;  %v132_v30 = vld [vmem:[#allocation5 + $0x2e8] sm:$0xff]  ;;  %v134_v32 = vld [vmem:[#allocation5 + $0x2f8] sm:$0xff]  ;;  %v589_v34 = vpack.c.bf16 %v117_v28, %v109_v26  ;;  %v123_v36 = vld [vmem:[#allocation5 + $0x2a0] sm:$0xff] }
  0x4b   :  { %303 = vmatmul.mubr.f32.vlgmr.msra.gmra.mrb[0].mxu1 %v735_v48  ;;  %542 = vmatpush1.bf16.msra.mxu0 %v541_v49  ;;  %v559_v35 = vpack.c.bf16 %v132_v30, %v124_v29  ;;  %v131_v37 = vld [vmem:[#allocation5 + $0x2e0] sm:$0xff]  ;;  %v125_v38 = vld [vmem:[#allocation5 + $0x2b0] sm:$0xff]  ;;  %v591_v39 = vpack.c.bf16 %v134_v32, %v126_v31  ;;  %v140_v41 = vld [vmem:[#allocation5 + $0x328] sm:$0xff] }
  0x4c   :  { %574 = vmatpush1.bf16.msra.mxu1 %v573_v50  ;;  %544 = vmatprep.subr.bf16.mxu0 %v543_v51  ;;  %v133_v40 = vld [vmem:[#allocation5 + $0x2f0] sm:$0xff]  ;;  %v148_v42 = vld [vmem:[#allocation5 + $0x368] sm:$0xff]  ;;  %v142_v43 = vld [vmem:[#allocation5 + $0x338] sm:$0xff]  ;;  %v561_v45 = vpack.c.bf16 %v131_v37, %v123_v36 }
  0x4d   :  { %576 = vmatprep.subr.bf16.mxu1 %v575_v55  ;;  %373 = vmatprep.mubr.f32.mxu0 %v685_v0  ;;  %v150_v44 = vld [vmem:[#allocation5 + $0x378] sm:$0xff]  ;;  %v593_v46 = vpack.c.bf16 %v133_v40, %v125_v38  ;;  %v563_v47 = vpack.c.bf16 %v148_v42, %v140_v41  ;;  %v139_v49 = vld [vmem:[#allocation5 + $0x320] sm:$0xff]  ;;  %v141_v51 = vld [vmem:[#allocation5 + $0x330] sm:$0xff] }
  0x4e   :  { %444 = vmatprep.mubr.f32.mxu1 %v685_v0  ;;  %v585_v0 = vpack.c.bf16 %v101_v17, %v93_v15  ;;  %v147_v50 = vld [vmem:[#allocation5 + $0x360] sm:$0xff]  ;;  %v595_v52 = vpack.c.bf16 %v150_v44, %v142_v43  ;;  %v149_v53 = vld [vmem:[#allocation5 + $0x370] sm:$0xff]  ;;  %v156_v54 = vld [vmem:[#allocation5 + $0x3a8] sm:$0xff] }
  0x4f   :  { %546 = vmatpush1.bf16.msra.mxu0 %v545_v61  ;;  %v164_v55 = vld [vmem:[#allocation5 + $0x3e8] sm:$0xff]  ;;  %v158_v56 = vld [vmem:[#allocation5 + $0x3b8] sm:$0xff]  ;;  %v565_v58 = vpack.c.bf16 %v147_v50, %v139_v49  ;;  %v597_v59 = vpack.c.bf16 %v149_v53, %v141_v51  ;;  %v155_v61 = vld [vmem:[#allocation5 + $0x3a0] sm:$0xff] }
  0x50   :  { %578 = vmatpush1.bf16.msra.mxu1 %v577_v62  ;;  %548 = vmatprep.subr.bf16.mxu0 %v547_v63  ;;  %v166_v57 = vld [vmem:[#allocation5 + $0x3f8] sm:$0xff]  ;;  %v567_v60 = vpack.c.bf16 %v164_v55, %v156_v54  ;;  %v163_v62 = vld [vmem:[#allocation5 + $0x3e0] sm:$0xff]  ;;  %v157_v1 = vld [vmem:[#allocation5 + $0x3b0] sm:$0xff] }
  0x51   :  { %580 = vmatprep.subr.bf16.mxu1 %v579_v4  ;;  %v599_v63 = vpack.c.bf16 %v166_v57, %v158_v56  ;;  %v165_v2 = vld [vmem:[#allocation5 + $0x3f0] sm:$0xff]  ;;  %v569_v3 = vpack.c.bf16 %v163_v62, %v155_v61 }
  0x52   :  { %v601_v4 = vpack.c.bf16 %v165_v2, %v157_v1 }
  0x53   :  { %550 = vmatpush1.bf16.msra.mxu0 %v549_v10 }
  0x54   :  { %582 = vmatpush1.bf16.msra.mxu1 %v581_v11  ;;  %552 = vmatprep.subr.bf16.mxu0 %v551_v12 }
  0x55   :  { %584 = vmatprep.subr.bf16.mxu1 %v583_v16 }
  0x57   :  { %554 = vmatpush1.bf16.msra.mxu0 %v553_v22 }
  0x58   :  { %586 = vmatpush1.bf16.msra.mxu1 %v585_v0  ;;  %556 = vmatprep.subr.bf16.mxu0 %v555_v23 }
  0x59   :  { %588 = vmatprep.subr.bf16.mxu1 %v587_v27 }
  0x5b   :  { %558 = vmatpush1.bf16.msra.mxu0 %v557_v33 }
  0x5c   :  { %590 = vmatpush1.bf16.msra.mxu1 %v589_v34  ;;  %560 = vmatprep.subr.bf16.mxu0 %v559_v35 }
  0x5d   :  { %592 = vmatprep.subr.bf16.mxu1 %v591_v39 }
  0x5f   :  { %562 = vmatpush1.bf16.msra.mxu0 %v561_v45 }
  0x60   :  { %594 = vmatpush1.bf16.msra.mxu1 %v593_v46  ;;  %564 = vmatprep.subr.bf16.mxu0 %v563_v47 }
  0x61   :  { %596 = vmatprep.subr.bf16.mxu1 %v595_v52 }
  0x63   :  { %566 = vmatpush1.bf16.msra.mxu0 %v565_v58 }
  0x64   :  { %598 = vmatpush1.bf16.msra.mxu1 %v597_v59  ;;  %568 = vmatprep.subr.bf16.mxu0 %v567_v60 }
  0x65   :  { %600 = vmatprep.subr.bf16.mxu1 %v599_v63 }
  0x67   :  { %570 = vmatpush1.bf16.msra.mxu0 %v569_v3 }
  0x68   :  { %602 = vmatpush1.bf16.msra.mxu1 %v601_v4 }
  0x6a   :  { %374 = vmatmul.mubr.f32.vlgmr.msra.gmra.mrb[2].mxu0 %v735_v48 }
  0x6b   :  { %445 = vmatmul.mubr.f32.vlgmr.msra.gmra.mrb[2].mxu1 %v735_v48 }
 0x11d   :  { %v233_v5 = vpop.f32.mrb[0].mxu0 }
 0x11e   :  { %451 = vst [vmem:[#allocation7] sm:$0xff] %v233_v5  ;;  %v304_v6 = vpop.f32.mrb[0].mxu1  ;;  %v235_v7 = vpop.f32.mrb[1].mxu0 }
 0x11f   :  { %453 = vst [vmem:[#allocation7 + $0x10] sm:$0xff] %v304_v6  ;;  %452 = vst [vmem:[#allocation7 + $0x8] sm:$0xff] %v235_v7  ;;  %v306_v8 = vpop.f32.mrb[1].mxu1 }
 0x120   :  { %454 = vst [vmem:[#allocation7 + $0x18] sm:$0xff] %v306_v8 }
 0x13d   :  { %v375_v9 = vpop.f32.mrb[2].mxu0 }
 0x13e   :  { %455 = vst [vmem:[#allocation7 + $0x20] sm:$0xff] %v375_v9  ;;  %v446_v10 = vpop.f32.mrb[2].mxu1  ;;  %v377_v11 = vpop.f32.mrb[3].mxu0 }
 0x13f   :  { %457 = vst [vmem:[#allocation7 + $0x30] sm:$0xff] %v446_v10  ;;  %456 = vst [vmem:[#allocation7 + $0x28] sm:$0xff] %v377_v11  ;;  %v448_v12 = vpop.f32.mrb[3].mxu1 }
 0x140   :  { %458 = vst [vmem:[#allocation7 + $0x38] sm:$0xff] %v448_v12 }
 0x141   :  { %664 = shalt.err (!%p661_p6)
}
 0x142   :  { %s665_s10 = scalar_lea.hbm %s757_s2, 1024 }
 0x143   :  { %p666_p7 = scmp.ne.s32.totalorder %s757_s2, %s665_s10  ;;  %p669_p8 = scmp.lt.u32.totalorder %s665_s10, %s757_s2 }
 0x145   :  { %p671_p9 = pnand %p669_p8, %p666_p7 }
 0x147   :  { %674 = shalt.err (!%p671_p9)
}
 0x148   :  { %468 = dma.vmem_to_hbm [thread:$0]  %s466_s6, 1024, %s757_s2, [#allocation4]  }
 0x149   :  { %679 = dma.done.wait [#allocation4], 1024  }
 0x14a   :  { %680 = vsyncadd [#allocation4], 4294966272 }
 0x14b   :  { %472 = vsyncpa [#allocation3], 1 }
 0x14c   :  { %473 = vsyncpa [#allocation6], 1 }
 0x14d   :  { %474 = vsyncpa [#allocation4], 1 }

</bundles_post_ra>
